<compile_context>
chip_gen: v6e
topology: v6e:2x2x1
jax: 0.10.0
libtpu: 0.0.40
codegen_flags: <defaults>
</compile_context>

<pallas_src>
import jax
import jax.numpy as jnp
from jax.experimental import pallas as pl
from jax.experimental.pallas import tpu as pltpu


_LANE = 128
_BF16_SUBLANES = 16                       # bf16 packs 16 rows per vreg
_VMEM_SIZING_BUDGET = 40 * 1024 * 1024    # working-set budget used to size TB
_VMEM_LIMIT_FLOOR = 24 * 1024 * 1024
_VMEM_LIMIT_CEIL = 58 * 1024 * 1024       # stay under v7x's 64 MiB physical VMEM


def _round_up(x, m):
    return ((x + m - 1) // m) * m


def _disc_kernel(sigma_ref, att_ref, feat_ref, w1_ref, b1_ref, w2_ref, b2_ref,
                 embed_ref, score_ref):
    # fc1 + relu: bf16 operands on the MXU, f32 accumulation; bias/relu on VPU.
    h = jnp.dot(att_ref[...], w1_ref[...], preferred_element_type=jnp.float32)
    h = jnp.maximum(h + b1_ref[...], 0.0)

    # fc2 + relu: dominant contraction (K = hidden, padded to 128x) full depth;
    # casting h back to bf16 halves vreg pressure and runs the MXU at bf16 rate.
    e = jnp.dot(h.astype(jnp.bfloat16), w2_ref[...],
                preferred_element_type=jnp.float32)
    e = jnp.maximum(e + b2_ref[...], 0.0)
    embed_ref[...] = e.astype(embed_ref.dtype)

    # sigma * cosine_similarity(e, feature) along the last dim, all in f32.
    f = feat_ref[...].astype(jnp.float32)
    dot = jnp.sum(e * f, axis=-1, keepdims=True)
    se2 = jnp.sum(e * e, axis=-1, keepdims=True)
    sf2 = jnp.sum(f * f, axis=-1, keepdims=True)
    # max(||e||*||f||, 1e-8) == sqrt(max(se2*sf2, 1e-16)) -> single EUP rsqrt.
    # NOTE: torch's documented formula clamps the product of norms (eps=1e-8);
    # newer torch clamps each norm separately — differs only for ~zero norms.
    inv_denom = jax.lax.rsqrt(jnp.maximum(se2 * sf2, 1e-16))
    sigma = sigma_ref[0]                  # scalar read from SMEM
    score_ref[...] = (sigma * dot * inv_denom).astype(score_ref.dtype)


def _estimate_vmem_bytes(tb, ap, hp, fp, embed_itemsize, weight_buffers):
    resident = weight_buffers * (ap * hp * 2 + hp * fp * 2 + hp * 4 + fp * 4)
    per_step = tb * ap * 2 + tb * fp * 4 + tb * fp * embed_itemsize + tb * 4
    pipelined = 2 * per_step                     # batch tiles stay double-buffered
    scratch = tb * hp * 4 + 3 * tb * fp * 4      # h + e/f/elementwise f32 temps
    return resident + pipelined + scratch


def _choose_tiling(batch, tile_b, ap, hp, fp, embed_itemsize, weight_buffers):
    bp16 = _round_up(max(batch, 1), _BF16_SUBLANES)
    tb = _round_up(tile_b if tile_b is not None else 512, _BF16_SUBLANES)
    tb = min(tb, bp16)
    # Keep >= 2 grid steps for non-tiny batches so a v7x chip's two TensorCores
    # both get work under dimension_semantics=("parallel",).
    if bp16 >= 4 * _BF16_SUBLANES:
        tb = min(tb, _round_up(pl.cdiv(bp16, 2), _BF16_SUBLANES))
    # Shrink TB only if the working set would exceed the VMEM sizing budget.
    while tb > _BF16_SUBLANES and _estimate_vmem_bytes(
            tb, ap, hp, fp, embed_itemsize, weight_buffers) > _VMEM_SIZING_BUDGET:
        tb = max(_BF16_SUBLANES, _round_up(tb // 2, _BF16_SUBLANES))
    bp = _round_up(batch, tb)
    need = _estimate_vmem_bytes(tb, ap, hp, fp, embed_itemsize, weight_buffers)
    vmem_limit = int(min(max(int(need * 1.4), _VMEM_LIMIT_FLOOR),
                         _VMEM_LIMIT_CEIL))
    return tb, bp, vmem_limit


def discriminator_forward(feature, att, w1, b1, w2, b2, sigma, *,
                          tile_b=None, single_buffer_weights=True,
                          embed_dtype=jnp.float32):
    """feature: [B, F] f32, att: [B, A] f32, w1: [A, H], b1: [H], w2: [H, F],
    b2: [F], sigma: scalar-like.  Returns (att_embed [B, F], score [B] f32)."""
    B, F = feature.shape
    A = att.shape[1]
    H = w1.shape[1]

    # Pad contraction / lane dims to multiples of 128 (zero padding is inert
    # for the matmuls, relu and cosine similarity; padded columns are sliced
    # off the embed output).
    Ap = _round_up(A, _LANE)
    Hp = _round_up(H, _LANE)
    Fp = _round_up(F, _LANE)

    embed_itemsize = jnp.dtype(embed_dtype).itemsize
    weight_buffers = 1 if single_buffer_weights else 2
    TB, Bp, vmem_limit = _choose_tiling(B, tile_b, Ap, Hp, Fp,
                                        embed_itemsize, weight_buffers)

    # bf16 matmul operands; biases / feature / accumulation stay f32.
    att_p = jnp.pad(att, ((0, Bp - B), (0, Ap - A))).astype(jnp.bfloat16)
    feat_p = jnp.pad(feature, ((0, Bp - B), (0, Fp - F))).astype(jnp.float32)
    w1_p = jnp.pad(w1, ((0, Ap - A), (0, Hp - H))).astype(jnp.bfloat16)
    w2_p = jnp.pad(w2, ((0, Hp - H), (0, Fp - F))).astype(jnp.bfloat16)
    b1_p = jnp.pad(b1, (0, Hp - H)).astype(jnp.float32).reshape(1, Hp)
    b2_p = jnp.pad(b2, (0, Fp - F)).astype(jnp.float32).reshape(1, Fp)
    sigma_smem = jnp.asarray(sigma, jnp.float32).reshape(-1)[:1]   # (1,) in SMEM

    grid = (Bp // TB,)
    row = lambda i: (i, 0)     # batch-tiled operands
    const = lambda i: (0, 0)   # weights / biases: fetched once, VMEM-resident

    def resident(shape):
        # Constant index_map => never re-fetched; single buffering halves the
        # resident VMEM footprint (batch tiles keep default double buffering).
        if single_buffer_weights:
            return pl.BlockSpec(shape, const, pipeline_mode=pl.Buffered(1))
        return pl.BlockSpec(shape, const)

    cost = pl.CostEstimate(
        flops=2 * Bp * (Ap * Hp + Hp * Fp) + 8 * Bp * Fp,
        transcendentals=Bp,
        bytes_accessed=(att_p.size * 2 + feat_p.size * 4
                        + w1_p.size * 2 + w2_p.size * 2 + (Hp + Fp + 1) * 4
                        + Bp * Fp * embed_itemsize + Bp * 4),
    )

    embed, score = pl.pallas_call(
        _disc_kernel,
        out_shape=(
            jax.ShapeDtypeStruct((Bp, Fp), embed_dtype),
            jax.ShapeDtypeStruct((Bp, 1), jnp.float32),
        ),
        grid=grid,
        in_specs=[
            pl.BlockSpec(memory_space=pltpu.MemorySpace.SMEM),   # sigma scalar
            pl.BlockSpec((TB, Ap), row),     # att tile
            pl.BlockSpec((TB, Fp), row),     # feature tile
            resident((Ap, Hp)),              # w1 (resident)
            resident((1, Hp)),               # b1 (resident)
            resident((Hp, Fp)),              # w2 (resident)
            resident((1, Fp)),               # b2 (resident)
        ],
        out_specs=(
            pl.BlockSpec((TB, Fp), row),     # att_embed (lane-dense)
            pl.BlockSpec((TB, 1), row),      # score (tiny; 1 vreg store / tile)
        ),
        compiler_params=pltpu.CompilerParams(
            dimension_semantics=("parallel",),
            vmem_limit_bytes=vmem_limit,
        ),
        cost_estimate=cost,
    )(sigma_smem, att_p, feat_p, w1_p, b1_p, w2_p, b2_p)

    return embed[:B, :F], score[:B, 0]


discriminator_forward_jit = jax.jit(
    discriminator_forward,
    static_argnames=("tile_b", "single_buffer_weights", "embed_dtype"))


if __name__ == "__main__":
    # Small, TPU-friendly stand-ins for (feature_size=2048, att_size=85, H=1600):
    # exercises A=85 -> 128 pad, H=96 -> 128 pad, F=200 -> 256 pad, 3 grid steps.
    B, A, H, F = 48, 85, 96, 200

    root = jax.random.PRNGKey(0)
    k_feat, k_att, k_w1, k_w2, k_b1, k_b2 = jax.random.split(root, 6)

    feature = jax.random.normal(k_feat, (B, F), jnp.float32)
    att = jax.random.normal(k_att, (B, A), jnp.float32)

    def xavier_uniform(key, fan_in, fan_out):
        limit = jnp.sqrt(6.0 / (fan_in + fan_out))
        return jax.random.uniform(key, (fan_in, fan_out), jnp.float32, -limit, limit)

    def torch_linear_default(key, fan_in, shape):
        bound = 1.0 / jnp.sqrt(jnp.float32(fan_in))
        return jax.random.uniform(key, shape, jnp.float32, -bound, bound)

    # fc1: xavier_uniform weight (as in __init__), default-init bias.
    w1 = xavier_uniform(k_w1, A, H)                 # [in, out] (transposed vs torch)
    b1 = torch_linear_default(k_b1, A, (H,))
    # fc2: PyTorch default init.
    w2 = torch_linear_default(k_w2, H, (H, F))      # [in, out]
    b2 = torch_linear_default(k_b2, H, (F,))
    sigma = jnp.array([10.0], dtype=jnp.float32)

    # tile_b=16 exercises a 3-step batch grid at these toy shapes; production
    # default is TB<=512 gated only by the VMEM budget.
    def run(single_buffer):
        out = discriminator_forward_jit(
            feature, att, w1, b1, w2, b2, sigma,
            tile_b=16, single_buffer_weights=single_buffer)
        jax.block_until_ready(out)
        return out

    try:
        embed, score = run(True)
    except Exception:
        # pl.Buffered(1) not supported on this jax build -> default buffering.
        embed, score = run(False)

    # Pure-JAX reference with the same bf16-operand / f32-accumulate matmuls.
    h_ref = jnp.maximum(
        jnp.dot(att.astype(jnp.bfloat16), w1.astype(jnp.bfloat16),
                preferred_element_type=jnp.float32) + b1, 0.0)
    e_ref = jnp.maximum(
        jnp.dot(h_ref.astype(jnp.bfloat16), w2.astype(jnp.bfloat16),
                preferred_element_type=jnp.float32) + b2, 0.0)
    dot = jnp.sum(e_ref * feature, axis=-1)
    denom = jnp.maximum(
        jnp.linalg.norm(e_ref, axis=-1) * jnp.linalg.norm(feature, axis=-1), 1e-8)
    score_ref = sigma[0] * dot / denom

    assert embed.shape == (B, F) and score.shape == (B,)
    assert jnp.allclose(embed, e_ref, atol=5e-3, rtol=5e-3), (
        float(jnp.max(jnp.abs(embed - e_ref))))
    assert jnp.allclose(score, score_ref, atol=5e-3, rtol=5e-3), (
        float(jnp.max(jnp.abs(score - score_ref))))

    print("KERNEL_OK")
</pallas_src>

<mosaic_0001>
module attributes {stable_mosaic.version = 11 : i64} {
  func.func @_disc_kernel(%arg0: i32, %arg1: memref<1xf32, #tpu.memory_space<smem>>, %arg2: memref<16x128xbf16, #tpu.memory_space<vmem>>, %arg3: memref<16x256xf32, #tpu.memory_space<vmem>>, %arg4: memref<128x128xbf16, #tpu.memory_space<vmem>>, %arg5: memref<1x128xf32, #tpu.memory_space<vmem>>, %arg6: memref<128x256xbf16, #tpu.memory_space<vmem>>, %arg7: memref<1x256xf32, #tpu.memory_space<vmem>>, %arg8: memref<16x256xf32, #tpu.memory_space<vmem>>, %arg9: memref<16x1xf32, #tpu.memory_space<vmem>>) attributes {dimension_semantics = [#tpu.dimension_semantics<parallel>], iteration_bounds = array<i64: 3>, scalar_prefetch = 0 : i64, scratch_operands = 0 : i64, tpu.core_type = #tpu.core_type<tc>, window_params = [{transform_indices = @transform_0, window_bounds = array<i64: 1>}, {transform_indices = @transform_1, window_bounds = array<i64: 16, 128>}, {transform_indices = @transform_2, window_bounds = array<i64: 16, 256>}, {pipeline_mode = #tpu.pipeline_mode<synchronous>, transform_indices = @transform_3, window_bounds = array<i64: 128, 128>}, {pipeline_mode = #tpu.pipeline_mode<synchronous>, transform_indices = @transform_4, window_bounds = array<i64: 1, 128>}, {pipeline_mode = #tpu.pipeline_mode<synchronous>, transform_indices = @transform_5, window_bounds = array<i64: 128, 256>}, {pipeline_mode = #tpu.pipeline_mode<synchronous>, transform_indices = @transform_6, window_bounds = array<i64: 1, 256>}, {transform_indices = @transform_7, window_bounds = array<i64: 16, 256>}, {transform_indices = @transform_8, window_bounds = array<i64: 16, 1>}]} {
    %c0 = arith.constant 0 : index
    %c0_0 = arith.constant 0 : index
    %0 = vector.load %arg2[%c0, %c0_0] : memref<16x128xbf16, #tpu.memory_space<vmem>>, vector<16x128xbf16>
    %c0_1 = arith.constant 0 : index
    %c0_2 = arith.constant 0 : index
    %1 = vector.load %arg4[%c0_1, %c0_2] : memref<128x128xbf16, #tpu.memory_space<vmem>>, vector<128x128xbf16>
    %cst = arith.constant dense<0.000000e+00> : vector<16x128xf32>
    %2 = tpu.matmul %0, %1, %cst {dimension_numbers = #tpu.dot_dimension_numbers<[1], [0], [0], [1], [0, 0, 1, 1], [], []>} : vector<16x128xbf16>, vector<128x128xbf16>, vector<16x128xf32> -> vector<16x128xf32>
    %c0_3 = arith.constant 0 : index
    %c0_4 = arith.constant 0 : index
    %3 = vector.load %arg5[%c0_3, %c0_4] : memref<1x128xf32, #tpu.memory_space<vmem>>, vector<1x128xf32>
    %4 = vector.broadcast %3 : vector<1x128xf32> to vector<16x128xf32>
    %5 = arith.addf %2, %4 : vector<16x128xf32>
    %cst_5 = arith.constant 0.000000e+00 : f32
    %6 = vector.broadcast %cst_5 : f32 to vector<16x128xf32>
    %7 = arith.maximumf %5, %6 : vector<16x128xf32>
    %8 = arith.truncf %7 : vector<16x128xf32> to vector<16x128xbf16>
    %c0_6 = arith.constant 0 : index
    %c0_7 = arith.constant 0 : index
    %9 = vector.load %arg6[%c0_6, %c0_7] : memref<128x256xbf16, #tpu.memory_space<vmem>>, vector<128x256xbf16>
    %cst_8 = arith.constant dense<0.000000e+00> : vector<16x256xf32>
    %10 = tpu.matmul %8, %9, %cst_8 {dimension_numbers = #tpu.dot_dimension_numbers<[1], [0], [0], [1], [0, 0, 1, 1], [], []>} : vector<16x128xbf16>, vector<128x256xbf16>, vector<16x256xf32> -> vector<16x256xf32>
    %c0_9 = arith.constant 0 : index
    %c0_10 = arith.constant 0 : index
    %11 = vector.load %arg7[%c0_9, %c0_10] : memref<1x256xf32, #tpu.memory_space<vmem>>, vector<1x256xf32>
    %12 = vector.broadcast %11 : vector<1x256xf32> to vector<16x256xf32>
    %13 = arith.addf %10, %12 : vector<16x256xf32>
    %cst_11 = arith.constant 0.000000e+00 : f32
    %14 = vector.broadcast %cst_11 : f32 to vector<16x256xf32>
    %15 = arith.maximumf %13, %14 : vector<16x256xf32>
    %c0_12 = arith.constant 0 : index
    %c0_13 = arith.constant 0 : index
    %16 = vector.load %arg8[%c0_12, %c0_13] : memref<16x256xf32, #tpu.memory_space<vmem>>, vector<16x256xf32>
    tpu.vector_store %arg8[%c0_12, %c0_13], %15 {strides = array<i32>} : memref<16x256xf32, #tpu.memory_space<vmem>>, vector<16x256xf32>,
    %c0_14 = arith.constant 0 : index
    %c0_15 = arith.constant 0 : index
    %17 = vector.load %arg3[%c0_14, %c0_15] : memref<16x256xf32, #tpu.memory_space<vmem>>, vector<16x256xf32>
    %18 = arith.mulf %15, %17 : vector<16x256xf32>
    %cst_16 = arith.constant dense<0.000000e+00> : vector<16xf32>
    %19 = vector.multi_reduction <add>, %18, %cst_16 [1] : vector<16x256xf32> to vector<16xf32>
    %20 = vector.shape_cast %19 : vector<16xf32> to vector<16x1xf32>
    %21 = arith.mulf %15, %15 : vector<16x256xf32>
    %cst_17 = arith.constant dense<0.000000e+00> : vector<16xf32>
    %22 = vector.multi_reduction <add>, %21, %cst_17 [1] : vector<16x256xf32> to vector<16xf32>
    %23 = vector.shape_cast %22 : vector<16xf32> to vector<16x1xf32>
    %24 = arith.mulf %17, %17 : vector<16x256xf32>
    %cst_18 = arith.constant dense<0.000000e+00> : vector<16xf32>
    %25 = vector.multi_reduction <add>, %24, %cst_18 [1] : vector<16x256xf32> to vector<16xf32>
    %26 = vector.shape_cast %25 : vector<16xf32> to vector<16x1xf32>
    %27 = arith.mulf %23, %26 : vector<16x1xf32>
    %cst_19 = arith.constant 1.000000e-16 : f32
    %28 = vector.broadcast %cst_19 : f32 to vector<16x1xf32>
    %29 = arith.maximumf %27, %28 : vector<16x1xf32>
    %30 = math.rsqrt %29 : vector<16x1xf32>
    %c0_20 = arith.constant 0 : index
    %31 = memref.load %arg1[%c0_20] : memref<1xf32, #tpu.memory_space<smem>>
    %32 = vector.broadcast %31 : f32 to vector<16x1xf32>
    %33 = arith.mulf %32, %20 : vector<16x1xf32>
    %34 = arith.mulf %33, %30 : vector<16x1xf32>
    %c0_21 = arith.constant 0 : index
    %c0_22 = arith.constant 0 : index
    %35 = vector.load %arg9[%c0_21, %c0_22] : memref<16x1xf32, #tpu.memory_space<vmem>>, vector<16x1xf32>
    tpu.vector_store %arg9[%c0_21, %c0_22], %34 {strides = array<i32>} : memref<16x1xf32, #tpu.memory_space<vmem>>, vector<16x1xf32>,
    return
  }
  func.func @transform_0(%arg0: i32) -> i32 {
    %c0_i32 = arith.constant 0 : i32
    %c0_i32_0 = arith.constant 0 : i32
    return %c0_i32 : i32
  }
  func.func @transform_1(%arg0: i32) -> (i32, i32) {
    %c0_i32 = arith.constant 0 : i32
    %c0_i32_0 = arith.constant 0 : i32
    return %arg0, %c0_i32 : i32, i32
  }
  func.func @transform_2(%arg0: i32) -> (i32, i32) {
    %c0_i32 = arith.constant 0 : i32
    %c0_i32_0 = arith.constant 0 : i32
    return %arg0, %c0_i32 : i32, i32
  }
  func.func @transform_3(%arg0: i32) -> (i32, i32) {
    %c0_i32 = arith.constant 0 : i32
    %c0_i32_0 = arith.constant 0 : i32
    %c0_i32_1 = arith.constant 0 : i32
    return %c0_i32, %c0_i32_0 : i32, i32
  }
  func.func @transform_4(%arg0: i32) -> (i32, i32) {
    %c0_i32 = arith.constant 0 : i32
    %c0_i32_0 = arith.constant 0 : i32
    %c0_i32_1 = arith.constant 0 : i32
    return %c0_i32, %c0_i32_0 : i32, i32
  }
  func.func @transform_5(%arg0: i32) -> (i32, i32) {
    %c0_i32 = arith.constant 0 : i32
    %c0_i32_0 = arith.constant 0 : i32
    %c0_i32_1 = arith.constant 0 : i32
    return %c0_i32, %c0_i32_0 : i32, i32
  }
  func.func @transform_6(%arg0: i32) -> (i32, i32) {
    %c0_i32 = arith.constant 0 : i32
    %c0_i32_0 = arith.constant 0 : i32
    %c0_i32_1 = arith.constant 0 : i32
    return %c0_i32, %c0_i32_0 : i32, i32
  }
  func.func @transform_7(%arg0: i32) -> (i32, i32) {
    %c0_i32 = arith.constant 0 : i32
    %c0_i32_0 = arith.constant 0 : i32
    return %arg0, %c0_i32 : i32, i32
  }
  func.func @transform_8(%arg0: i32) -> (i32, i32) {
    %c0_i32 = arith.constant 0 : i32
    %c0_i32_0 = arith.constant 0 : i32
    return %arg0, %c0_i32 : i32, i32
  }
}

module attributes {stable_mosaic.version = 11 : i64} {
  func.func @_disc_kernel(%arg0: i32, %arg1: memref<1xf32, #tpu.memory_space<smem>>, %arg2: memref<16x128xbf16, #tpu.memory_space<vmem>>, %arg3: memref<16x256xf32, #tpu.memory_space<vmem>>, %arg4: memref<128x128xbf16, #tpu.memory_space<vmem>>, %arg5: memref<1x128xf32, #tpu.memory_space<vmem>>, %arg6: memref<128x256xbf16, #tpu.memory_space<vmem>>, %arg7: memref<1x256xf32, #tpu.memory_space<vmem>>, %arg8: memref<16x256xf32, #tpu.memory_space<vmem>>, %arg9: memref<16x1xf32, #tpu.memory_space<vmem>>) attributes {dimension_semantics = [#tpu.dimension_semantics<parallel>], iteration_bounds = array<i64: 3>, scalar_prefetch = 0 : i64, scratch_operands = 0 : i64, tpu.core_type = #tpu.core_type<tc>, window_params = [{transform_indices = @transform_0, window_bounds = array<i64: 1>}, {transform_indices = @transform_1, window_bounds = array<i64: 16, 128>}, {transform_indices = @transform_2, window_bounds = array<i64: 16, 256>}, {pipeline_mode = #tpu.pipeline_mode<synchronous>, transform_indices = @transform_3, window_bounds = array<i64: 128, 128>}, {pipeline_mode = #tpu.pipeline_mode<synchronous>, transform_indices = @transform_4, window_bounds = array<i64: 1, 128>}, {pipeline_mode = #tpu.pipeline_mode<synchronous>, transform_indices = @transform_5, window_bounds = array<i64: 128, 256>}, {pipeline_mode = #tpu.pipeline_mode<synchronous>, transform_indices = @transform_6, window_bounds = array<i64: 1, 256>}, {transform_indices = @transform_7, window_bounds = array<i64: 16, 256>}, {transform_indices = @transform_8, window_bounds = array<i64: 16, 1>}]} {
    %c0 = arith.constant 0 : index
    %c0_0 = arith.constant 0 : index
    %0 = vector.load %arg2[%c0, %c0_0] : memref<16x128xbf16, #tpu.memory_space<vmem>>, vector<16x128xbf16>
    %c0_1 = arith.constant 0 : index
    %c0_2 = arith.constant 0 : index
    %1 = vector.load %arg4[%c0_1, %c0_2] : memref<128x128xbf16, #tpu.memory_space<vmem>>, vector<128x128xbf16>
    %cst = arith.constant dense<0.000000e+00> : vector<16x128xf32>
    %2 = tpu.matmul %0, %1, %cst {dimension_numbers = #tpu.dot_dimension_numbers<[1], [0], [0], [1], [0, 0, 1, 1], [], []>} : vector<16x128xbf16>, vector<128x128xbf16>, vector<16x128xf32> -> vector<16x128xf32>
    %c0_3 = arith.constant 0 : index
    %c0_4 = arith.constant 0 : index
    %3 = vector.load %arg5[%c0_3, %c0_4] : memref<1x128xf32, #tpu.memory_space<vmem>>, vector<1x128xf32>
    %4 = vector.broadcast %3 : vector<1x128xf32> to vector<16x128xf32>
    %5 = arith.addf %2, %4 : vector<16x128xf32>
    %cst_5 = arith.constant 0.000000e+00 : f32
    %6 = vector.broadcast %cst_5 : f32 to vector<16x128xf32>
    %7 = arith.maximumf %5, %6 : vector<16x128xf32>
    %8 = arith.truncf %7 : vector<16x128xf32> to vector<16x128xbf16>
    %c0_6 = arith.constant 0 : index
    %c0_7 = arith.constant 0 : index
    %9 = vector.load %arg6[%c0_6, %c0_7] : memref<128x256xbf16, #tpu.memory_space<vmem>>, vector<128x256xbf16>
    %cst_8 = arith.constant dense<0.000000e+00> : vector<16x256xf32>
    %10 = tpu.matmul %8, %9, %cst_8 {dimension_numbers = #tpu.dot_dimension_numbers<[1], [0], [0], [1], [0, 0, 1, 1], [], []>} : vector<16x128xbf16>, vector<128x256xbf16>, vector<16x256xf32> -> vector<16x256xf32>
    %c0_9 = arith.constant 0 : index
    %c0_10 = arith.constant 0 : index
    %11 = vector.load %arg7[%c0_9, %c0_10] : memref<1x256xf32, #tpu.memory_space<vmem>>, vector<1x256xf32>
    %12 = vector.broadcast %11 : vector<1x256xf32> to vector<16x256xf32>
    %13 = arith.addf %10, %12 : vector<16x256xf32>
    %cst_11 = arith.constant 0.000000e+00 : f32
    %14 = vector.broadcast %cst_11 : f32 to vector<16x256xf32>
    %15 = arith.maximumf %13, %14 : vector<16x256xf32>
    %c0_12 = arith.constant 0 : index
    %c0_13 = arith.constant 0 : index
    %16 = vector.load %arg8[%c0_12, %c0_13] : memref<16x256xf32, #tpu.memory_space<vmem>>, vector<16x256xf32>
    tpu.vector_store %arg8[%c0_12, %c0_13], %15 {strides = array<i32>} : memref<16x256xf32, #tpu.memory_space<vmem>>, vector<16x256xf32>,
    %c0_14 = arith.constant 0 : index
    %c0_15 = arith.constant 0 : index
    %17 = vector.load %arg3[%c0_14, %c0_15] : memref<16x256xf32, #tpu.memory_space<vmem>>, vector<16x256xf32>
    %18 = arith.mulf %15, %17 : vector<16x256xf32>
    %cst_16 = arith.constant dense<0.000000e+00> : vector<16xf32>
    %19 = vector.multi_reduction <add>, %18, %cst_16 [1] : vector<16x256xf32> to vector<16xf32>
    %20 = vector.shape_cast %19 : vector<16xf32> to vector<16x1xf32>
    %21 = arith.mulf %15, %15 : vector<16x256xf32>
    %cst_17 = arith.constant dense<0.000000e+00> : vector<16xf32>
    %22 = vector.multi_reduction <add>, %21, %cst_17 [1] : vector<16x256xf32> to vector<16xf32>
    %23 = vector.shape_cast %22 : vector<16xf32> to vector<16x1xf32>
    %24 = arith.mulf %17, %17 : vector<16x256xf32>
    %cst_18 = arith.constant dense<0.000000e+00> : vector<16xf32>
    %25 = vector.multi_reduction <add>, %24, %cst_18 [1] : vector<16x256xf32> to vector<16xf32>
    %26 = vector.shape_cast %25 : vector<16xf32> to vector<16x1xf32>
    %27 = arith.mulf %23, %26 : vector<16x1xf32>
    %cst_19 = arith.constant 1.000000e-16 : f32
    %28 = vector.broadcast %cst_19 : f32 to vector<16x1xf32>
    %29 = arith.maximumf %27, %28 : vector<16x1xf32>
    %30 = math.rsqrt %29 : vector<16x1xf32>
    %c0_20 = arith.constant 0 : index
    %31 = memref.load %arg1[%c0_20] : memref<1xf32, #tpu.memory_space<smem>>
    %32 = vector.broadcast %31 : f32 to vector<16x1xf32>
    %33 = arith.mulf %32, %20 : vector<16x1xf32>
    %34 = arith.mulf %33, %30 : vector<16x1xf32>
    %c0_21 = arith.constant 0 : index
    %c0_22 = arith.constant 0 : index
    %35 = vector.load %arg9[%c0_21, %c0_22] : memref<16x1xf32, #tpu.memory_space<vmem>>, vector<16x1xf32>
    tpu.vector_store %arg9[%c0_21, %c0_22], %34 {strides = array<i32>} : memref<16x1xf32, #tpu.memory_space<vmem>>, vector<16x1xf32>,
    return
  }
  func.func @transform_0(%arg0: i32) -> i32 {
    %c0_i32 = arith.constant 0 : i32
    %c0_i32_0 = arith.constant 0 : i32
    return %c0_i32 : i32
  }
  func.func @transform_1(%arg0: i32) -> (i32, i32) {
    %c0_i32 = arith.constant 0 : i32
    %c0_i32_0 = arith.constant 0 : i32
    return %arg0, %c0_i32 : i32, i32
  }
  func.func @transform_2(%arg0: i32) -> (i32, i32) {
    %c0_i32 = arith.constant 0 : i32
    %c0_i32_0 = arith.constant 0 : i32
    return %arg0, %c0_i32 : i32, i32
  }
  func.func @transform_3(%arg0: i32) -> (i32, i32) {
    %c0_i32 = arith.constant 0 : i32
    %c0_i32_0 = arith.constant 0 : i32
    %c0_i32_1 = arith.constant 0 : i32
    return %c0_i32, %c0_i32_0 : i32, i32
  }
  func.func @transform_4(%arg0: i32) -> (i32, i32) {
    %c0_i32 = arith.constant 0 : i32
    %c0_i32_0 = arith.constant 0 : i32
    %c0_i32_1 = arith.constant 0 : i32
    return %c0_i32, %c0_i32_0 : i32, i32
  }
  func.func @transform_5(%arg0: i32) -> (i32, i32) {
    %c0_i32 = arith.constant 0 : i32
    %c0_i32_0 = arith.constant 0 : i32
    %c0_i32_1 = arith.constant 0 : i32
    return %c0_i32, %c0_i32_0 : i32, i32
  }
  func.func @transform_6(%arg0: i32) -> (i32, i32) {
    %c0_i32 = arith.constant 0 : i32
    %c0_i32_0 = arith.constant 0 : i32
    %c0_i32_1 = arith.constant 0 : i32
    return %c0_i32, %c0_i32_0 : i32, i32
  }
  func.func @transform_7(%arg0: i32) -> (i32, i32) {
    %c0_i32 = arith.constant 0 : i32
    %c0_i32_0 = arith.constant 0 : i32
    return %arg0, %c0_i32 : i32, i32
  }
  func.func @transform_8(%arg0: i32) -> (i32, i32) {
    %c0_i32 = arith.constant 0 : i32
    %c0_i32_0 = arith.constant 0 : i32
    return %arg0, %c0_i32 : i32, i32
  }
}

</mosaic_0001>

<bundles_post_ra>
// kernel: discriminator_forward.1
= control target key start
LH: loop header
LB: loop body
LE: loop exit
PB: predicated region body
PF: predicated region fallthrough
CT: control target
= control target key end

     0   :  { %s1279_s0 = inlined_call_operand.<no memory space> [shape: f32[1], index: 0, kind: input, shape index: {}]   ;;  %s1280_s1 = inlined_call_operand.vmem [shape: bf16[48,128], index: 1, kind: input, shape index: {}]   ;;  %s1281_s2 = inlined_call_operand.vmem [shape: f32[48,256], index: 2, kind: input, shape index: {}]   ;;  %s1282_s3 = inlined_call_operand.vmem [shape: bf16[128,128], index: 3, kind: input, shape index: {}]   ;;  %s1283_s4 = inlined_call_operand.vmem [shape: f32[1,128], index: 4, kind: input, shape index: {}]   ;;  %s1284_s5 = inlined_call_operand.vmem [shape: bf16[128,256], index: 5, kind: input, shape index: {}]   ;;  %s1285_s6 = inlined_call_operand.vmem [shape: f32[1,256], index: 6, kind: input, shape index: {}]   ;;  %s1286_s7 = inlined_call_operand.hbm [shape: f32[48,256], index: 7, kind: output, shape index: {0}]   ;;  %s1287_s8 = inlined_call_operand.vmem [shape: f32[48,1], index: 8, kind: output, shape index: {1}]  }
   0x1   :  { %14 = sst [smem:[#allocation2]] %s1279_s0 }
   0x2   :  { %15 = vsyncpa [#allocation4], 0 }
   0x3   :  { %17 = vsyncpa [#allocation4 + $0x1], 0  ;;  %s1075_s29 = smov 0   ;;  %s1077_s30 = smov 0  }
   0x4   :  { %s1079_s9 = smov 0   ;;  %s1081_s10 = smov 0  }
   0x5 LB: > { %s1096_s0 = sadd.s32 4294967295, %s1019_s10   ;;  %s802_s11 = sadd.s32 4294967294, %s1019_s10   ;;  %s1019_s10 = sphi %s1081_s10, %s1293_s10   ;;  %s1015_s9 = sphi %s1079_s9, %s1292_s9   ;;  %s1011_s30 = sphi %s1077_s30, %s1291_s30   ;;  %s1007_s29 = sphi %s1075_s29, %s1290_s29  }
   0x6   : > { %s1100_s12 = sadd.s32 1, %s1019_s10   ;;  %s187_s13 = sadd.s32 1, %s1015_s9 }
   0x7   : > { %s184_s14 = ssub.s32 %s1019_s10, %s1100_s12  ;;  %p197_p0 = scmp.ne.s32.totalorder %s1015_s9, %s1011_s30 }
   0x8   : > { %p185_p1 = scmp.eq.s32.totalorder %s184_s14, 0  ;;  %p198_p2 = scmp.eq.s32.totalorder %s1096_s0, 2 }
   0x9   : > { %p203_p3 = scmp.ne.s32.totalorder %s1011_s30, %s1007_s29  ;;  %p204_p4 = scmp.eq.s32.totalorder %s802_s11, 2 }
   0xa   : > { %s1111_s15 = scalar_select %p185_p1, %s1015_s9, %s187_s13  }
   0xb   : > { %p1113_p5 = por %p198_p2, %p197_p0  ;;  %p1117_p6 = por %p204_p4, %p203_p3 }
   0xc   : > { %p805_p7 = scmp.ge.s32.totalorder %s1019_s10, 1  ;;  %p282_p8 = scmp.lt.s32.totalorder %s1019_s10, 4 }
   0xe   : > { %p283_p9 = pnand %p805_p7, %p282_p8 }
   0xf   : > { %s807_s22 = sshll.u32 (!%p283_p9), %s1096_s0, 1  ;;  %s848_s19 = sshll.u32 (!%p283_p9), %s1096_s0, 9 }
  0x10   : > { %286 = sbr.rel (%p283_p9) target bundleno = 627 (0x273), region = 48  ;;  %p328_p10 = scmp.lt.s32.totalorder (!%p283_p9), %s807_s22, 5 }
  0x11   : > { %s1231_s23 = scalar_lea.hbm (!%p283_p9), %s1286_s7, %s848_s19 }
  0x15   : > { %v922_v0 = vld [vmem:[%s1282_s3 + $0x38] sm:$0xff]   ;;  %v1021_v1 = vmov 0.0   ;;  %v923_v2 = vld [vmem:[%s1282_s3 + $0x30] sm:$0xff]   ;;  %vm1022_vm0 = vmmov 0   ;;  %s1295_s22 = smov (!%p328_p10, %s807_s22), 5  ;;  %v924_v3 = vld [vmem:[%s1282_s3 + $0x28] sm:$0xff]   ;;  %v489_v37 = vlaneseq }
  0x16   : > { %858 = vmatprep.subr.bf16.mxu0 %v1021_v1  ;;  %874 = vmatprep.mubr.msk.bf16.mxu0 %vm1022_vm0, %v1021_v1  ;;  %s808_s25 = sshll.u32 %s1295_s22, 2  ;;  %v931_v4 = vld [vmem:[%s1284_s5 + $0x74] ss:$8 sps:$4 sm:$0xff]   ;;  %v925_v5 = vld [vmem:[%s1282_s3 + $0x20] sm:$0xff]   ;;  %v933_v6 = vld [vmem:[%s1284_s5 + $0x70] ss:$8 sps:$4 sm:$0xff]  }
  0x17   : > { %859 = vmatpush3.bf16.msra.mxu0 %v922_v0  ;;  %s1139_s28 = scalar_lea.vmem %s1280_s1, %s808_s25  ;;  %579 = vmatprep.subr.bf16.mxu1 %v931_v4  ;;  %v934_v7 = vld [vmem:[%s1284_s5 + $0x64] ss:$8 sps:$4 sm:$0xff]   ;;  %v936_v8 = vld [vmem:[%s1284_s5 + $0x60] ss:$8 sps:$4 sm:$0xff]   ;;  %v937_v9 = vld [vmem:[%s1284_s5 + $0x54] ss:$8 sps:$4 sm:$0xff]  }
  0x18   : > { %860 = vmatprep.subr.bf16.mxu0 %v1021_v1  ;;  %580 = vmatpush1.bf16.msra.mxu1 %v933_v6  ;;  %v926_v10 = vld [vmem:[%s1282_s3 + $0x18] sm:$0xff]   ;;  %v940_v12 = vld [vmem:[%s1284_s5 + $0x44] ss:$8 sps:$4 sm:$0xff]   ;;  %v927_v13 = vld [vmem:[%s1282_s3 + $0x10] sm:$0xff]   ;;  %v1023_v26 = vmov 0   ;;  %v490_v38 = vshrl.u32 %v489_v37, 7 }
  0x19   : > { %581 = vmatprep.subr.bf16.mxu1 %v934_v7  ;;  %v939_v11 = vld [vmem:[%s1284_s5 + $0x50] ss:$8 sps:$4 sm:$0xff]   ;;  %v942_v14 = vld [vmem:[%s1284_s5 + $0x40] ss:$8 sps:$4 sm:$0xff]   ;;  %v943_v15 = vld [vmem:[%s1284_s5 + $0x34] ss:$8 sps:$4 sm:$0xff]   ;;  %611 = vmatprep.mubr.bf16.mxu1 %v1023_v26 }
  0x1a   : > { %v928_v16 = vld [vmem:[%s1282_s3 + $0x8] sm:$0xff]   ;;  %v945_v17 = vld [vmem:[%s1284_s5 + $0x30] ss:$8 sps:$4 sm:$0xff]   ;;  %v929_v19 = vld [vmem:[%s1282_s3] sm:$0xff]   ;;  %v491_v39 = vsub.s32 0, %v490_v38  ;;  %v495_v41 = vsub.s32 1, %v490_v38 }
  0x1b   : > { %861 = vmatpush3.bf16.msra.mxu0 %v923_v2  ;;  %v946_v18 = vld [vmem:[%s1284_s5 + $0x24] ss:$8 sps:$4 sm:$0xff]   ;;  %v948_v21 = vld [vmem:[%s1284_s5 + $0x20] ss:$8 sps:$4 sm:$0xff]   ;;  %v949_v22 = vld [vmem:[%s1284_s5 + $0x14] ss:$8 sps:$4 sm:$0xff]  }
  0x1c   : > { %862 = vmatprep.subr.bf16.mxu0 %v1021_v1  ;;  %582 = vmatpush1.bf16.msra.mxu1 %v936_v8  ;;  %v930_v20 = vld [vmem:[%s1139_s28] sm:$0xff]   ;;  %v951_v23 = vld [vmem:[%s1284_s5 + $0x10] ss:$8 sps:$4 sm:$0xff]   ;;  %s317_s25 = sand.u32 1, %s1011_s30   ;;  %s846_s27 = sshll.u32 %s1295_s22, 4 }
  0x1d   : > { %583 = vmatprep.subr.bf16.mxu1 %v937_v9  ;;  %v952_v24 = vld [vmem:[%s1284_s5 + $0x4] ss:$8 sps:$4 sm:$0xff]   ;;  %v954_v25 = vld [vmem:[%s1284_s5] ss:$8 sps:$4 sm:$0xff]   ;;  %s806_s26 = sshll.u32 %s317_s25, 5  ;;  %s338_s14 = scalar_lea.vmem %s1281_s2, %s846_s27 }
  0x1e   : > { %v814_v27 = vld [vmem:[%s1283_s4] ss:$0 sm:$0xff]  ;;  %s1218_s28 = scalar_lea.vmem [#allocation3], %s806_s26  ;;  %v631_v53 = vld [vmem:[%s338_s14 + $0x8] sm:$0xff]  ;;  %v632_v0 = vld [vmem:[%s338_s14 + $0x10] sm:$0xff]  ;;  %s1235_s24 = scalar_lea.sflag [#allocation4], %s317_s25 }
  0x1f   : > { %863 = vmatpush3.bf16.msra.mxu0 %v924_v3  ;;  %v487_v40 = vld [vmem:[%s1285_s6] sm:$0x3]  ;;  %v655_v56 = vmul.f32 %v631_v53, %v631_v53  ;;  %v656_v4 = vmul.f32 %v632_v0, %v632_v0  ;;  %s699_s18 = sshll.u32 %s1218_s28, 4  ;;  %s1024_s27 = smov [#allocation3]   ;;  %s1225_s18 = int_to_ptr.vmem [resolvable:$true] %s699_s18 }
  0x20   : > { %864 = vmatprep.subr.bf16.mxu0 %v1021_v1  ;;  %584 = vmatpush1.bf16.msra.mxu1 %v939_v11  ;;  %v492_v42 = vrot.slane %v487_v40, %v491_v39  ;;  %v496_v43 = vrot.slane %v487_v40, %v495_v41  ;;  %v630_v52 = vld [vmem:[%s338_s14] sm:$0xff]  ;;  %s959_s26 = scalar_lea.vmem %s1225_s18, 512  ;;  %s963_s11 = sshll.u32 %s1024_s27, 4  ;;  %s964_s11 = int_to_ptr.vmem [resolvable:$false] %s963_s11 }
  0x21   : > { %585 = vmatprep.subr.bf16.mxu1 %v940_v12  ;;  %v654_v55 = vmul.f32 %v630_v52, %v630_v52  ;;  %p960_p11 = scmp.ne.s32.totalorder %s1225_s18, %s959_s26  ;;  %s965_s13 = scalar_lea.vmem %s964_s11, 1024 }
  0x22   : > { %p966_p0 = scmp.lt.s32.totalorder %s1225_s18, %s964_s11  ;;  %p967_p1 = scmp.lt.s32.totalorder %s965_s13, %s959_s26 }
  0x23   : > { %865 = vmatpush3.bf16.msra.mxu0 %v925_v5  ;;  %v658_v63 = vadd.f32 %v655_v56, %v654_v55  ;;  %p961_p12 = pnand %p960_p11, %p1113_p5 }
  0x24   : > { %866 = vmatprep.subr.bf16.mxu0 %v1021_v1  ;;  %586 = vmatpush1.bf16.msra.mxu1 %v942_v14  ;;  %p968_p2 = por %p967_p1, %p966_p0 }
  0x25   : > { %587 = vmatprep.subr.bf16.mxu1 %v943_v15  ;;  %p962_p13 = pneg %p961_p12 }
  0x27   : > { %867 = vmatpush3.bf16.msra.mxu0 %v926_v10  ;;  %p969_p3 = pnand %p968_p2, %p962_p13 }
  0x28   : > { %868 = vmatprep.subr.bf16.mxu0 %v1021_v1  ;;  %588 = vmatpush1.bf16.msra.mxu1 %v945_v17 }
  0x29   : > { %589 = vmatprep.subr.bf16.mxu1 %v946_v18 }
  0x2b   : > { %869 = vmatpush3.bf16.msra.mxu0 %v927_v13 }
  0x2c   : > { %870 = vmatprep.subr.bf16.mxu0 %v1021_v1  ;;  %590 = vmatpush1.bf16.msra.mxu1 %v948_v21 }
  0x2d   : > { %591 = vmatprep.subr.bf16.mxu1 %v949_v22 }
  0x2f   : > { %871 = vmatpush3.bf16.msra.mxu0 %v928_v16 }
  0x30   : > { %872 = vmatprep.subr.bf16.mxu0 %v1021_v1  ;;  %592 = vmatpush1.bf16.msra.mxu1 %v951_v23  ;;  %v633_v1 = vld [vmem:[%s338_s14 + $0x18] sm:$0xff] }
  0x31   : > { %593 = vmatprep.subr.bf16.mxu1 %v952_v24  ;;  %v657_v5 = vmul.f32 %v633_v1, %v633_v1 }
  0x33   : > { %873 = vmatpush3.bf16.msra.mxu0 %v929_v19  ;;  %v661_v8 = vadd.f32 %v657_v5, %v656_v4 }
  0x34   : > { %594 = vmatpush1.bf16.msra.mxu1 %v954_v25 }
  0x36   : > { %875 = vmatmul.mubr.bf16.vlgmr.msra.gmra.mxu0 %v930_v20 }
  0xf6   : > { %v461_v28 = vpop.f32.mrf.mxu0 }
  0xf7   : > { %v462_v30 = vadd.f32 %v814_v27, %v461_v28 }
  0xf8   : > { %v876_v29 = vpop.f32.mrf.mxu0 }
  0xf9   : > { %v468_v34 = vmax.f32 %v462_v30, 0.0 }
  0xfa   : > { %v464_v31 = vpop.f32.mrf.mxu0 }
  0xfb   : > { %v465_v32 = vadd.f32 %v814_v27, %v464_v31 }
  0xfc   : > { %v877_v33 = vpop.f32.mrf.mxu0 }
  0xfd   : > { %v469_v35 = vmax.f32 %v465_v32, 0.0 }
  0xff   : > { %v470_v36 = vpack.c.bf16 %v469_v35, %v468_v34 }
 0x101   : > { %612 = vmatmul.mubr.bf16.vlgmr.msra.gmra.mxu1 %v470_v36 }
 0x1c1   : > { %v613_v44 = vpop.f32.mrf.mxu1 }
 0x1c2   : > { %v614_v45 = vadd.f32 %v613_v44, %v492_v42 }
 0x1c3   : > { %v615_v46 = vpop.f32.mrf.mxu1 }
 0x1c4   : > { %v622_v47 = vmax.f32 %v614_v45, 0.0  ;;  %v616_v48 = vadd.f32 %v615_v46, %v496_v43 }
 0x1c5   : > { %v617_v49 = vpop.f32.mrf.mxu1 }
 0x1c6   : > { %626 = vst [vmem:[%s1218_s28] sm:$0xff] %v622_v47  ;;  %v623_v50 = vmax.f32 %v616_v48, 0.0  ;;  %v618_v51 = vadd.f32 %v617_v49, %v492_v42  ;;  %v644_v59 = vmul.f32 %v622_v47, %v622_v47  ;;  %v634_v9 = vmul.f32 %v630_v52, %v622_v47 }
 0x1c7   : > { %v619_v54 = vpop.f32.mrf.mxu1 }
 0x1c8   : > { %627 = vst [vmem:[%s1218_s28 + $0x8] sm:$0xff] %v623_v50  ;;  %v624_v57 = vmax.f32 %v618_v51, 0.0  ;;  %v620_v58 = vadd.f32 %v619_v54, %v496_v43  ;;  %v645_v60 = vmul.f32 %v623_v50, %v623_v50  ;;  %v635_v7 = vmul.f32 %v631_v53, %v623_v50 }
 0x1ca   : > { %628 = vst [vmem:[%s1218_s28 + $0x10] sm:$0xff] %v624_v57  ;;  %v625_v61 = vmax.f32 %v620_v58, 0.0  ;;  %v648_v62 = vadd.f32 %v645_v60, %v644_v59  ;;  %v646_v2 = vmul.f32 %v624_v57, %v624_v57  ;;  %v638_v10 = vadd.f32 %v635_v7, %v634_v9 }
 0x1cb   : > { %v636_v12 = vmul.f32 %v632_v0, %v624_v57 }
 0x1cc   : > { %629 = vst [vmem:[%s1218_s28 + $0x18] sm:$0xff] %v625_v61  ;;  %649 = vadd.xlane.f32.xlu0 %v648_v62  ;;  %v647_v3 = vmul.f32 %v625_v61, %v625_v61  ;;  %v637_v11 = vmul.f32 %v633_v1, %v625_v61 }
 0x1ce   : > { %v651_v6 = vadd.f32 %v647_v3, %v646_v2  ;;  %v641_v13 = vadd.f32 %v637_v11, %v636_v12 }
 0x1d0   : > { %652 = vadd.xlane.f32.xlu1 %v651_v6  ;;  %659 = vadd.xlane.f32.xlu0 %v658_v63 }
 0x1d4   : > { %662 = vadd.xlane.f32.xlu1 %v661_v8  ;;  %639 = vadd.xlane.f32.xlu0 %v638_v10 }
 0x1d8   : > { %642 = vadd.xlane.f32.xlu1 %v641_v13 }
 0x1d9   : > { %972 = shalt.err (!%p969_p3)
}
 0x1da   : > { %s973_s0 = scalar_lea.hbm %s1231_s23, 512  ;;  %s977_s28 = scalar_lea.hbm %s1286_s7, 1536 }
 0x1db   : > { %p974_p4 = scmp.ne.s32.totalorder %s1231_s23, %s973_s0  ;;  %p978_p9 = scmp.lt.s32.totalorder %s1231_s23, %s1286_s7 }
 0x1dc   : > { %p979_p10 = scmp.lt.s32.totalorder %s977_s28, %s973_s0 }
 0x1dd   : > { %p975_p7 = pnand %p974_p4, %p1113_p5 }
 0x1de   : > { %p980_p11 = por %p979_p10, %p978_p9 }
 0x1df   : > { %p976_p8 = pneg %p975_p7 }
 0x1e1   : > { %p981_p12 = pnand %p980_p11, %p976_p8 }
 0x1e3   : > { %984 = shalt.err (!%p981_p12)
}
 0x1e4   : > { %s1025_s21 = smov 256   ;;  %s1026_s26 = smov 16   ;;  %vm676_vm1 = vcmask 7168  }
 0x1e5   : > { %878 = dma.vmem_to_hbm [thread:$0]  (%p1113_p5), %s1225_s18, 512, %s1231_s23, %s1235_s24, %s1025_s21, %s1025_s21, %s1026_s26  }
 0x1e6   : > { %s670_s27 = sld [smem:[#allocation2]]  ;;  %s813_s11 = sshll.u32 %s1295_s22, 3 }
 0x1e7   : > { %s345_s16 = scalar_lea.vmem %s1287_s8, %s813_s11 }
 0x1ec   : > { %v671_v22 = vstv %s670_s27 }
 0x255   : > { %v650_v14 = vpop.xlane.xlu0 %649 }
 0x259   : > { %v653_v15 = vpop.xlane.xlu1 %652  ;;  %v660_v16 = vpop.xlane.xlu0 %659 }
 0x25a   : > { %v664_v17 = vmul.f32 %v660_v16, %v650_v14 }
 0x25c   : > { %v666_v18 = vmax.f32 %v664_v17, 1e-16 }
 0x25d   : > { %v663_v19 = vpop.xlane.xlu1 %662  ;;  %v640_v23 = vpop.xlane.xlu0 %639 }
 0x25e   : > { %955 = vrsqrt.f32 %v666_v18  ;;  %v665_v20 = vmul.f32 %v663_v19, %v653_v15  ;;  %v672_v24 = vmul.f32 %v671_v22, %v640_v23 }
 0x260   : > { %v667_v21 = vmax.f32 %v665_v20, 1e-16 }
 0x261   : > { %v643_v26 = vpop.xlane.xlu1 %642 }
 0x262   : > { %957 = vrsqrt.f32 %v667_v21  ;;  %v673_v28 = vmul.f32 %v671_v22, %v643_v26 }
 0x26b   : > { %v956_v25 = vpop.eup %955 }
 0x26c   : > { %v674_v27 = vmul.f32 %v956_v25, %v672_v24 }
 0x26e   : > { %677 = vst.msk [vmem:[%s345_s16] sm:$0xff] %vm676_vm1, %v674_v27 }
 0x26f   : > { %v958_v29 = vpop.eup %957 }
 0x270   : > { %v675_v30 = vmul.f32 %v958_v29, %v673_v28 }
 0x272   : > { %678 = vst.msk [vmem:[%s345_s16 + $0x8] sm:$0xff] %vm676_vm1, %v675_v30 }
 0x273 PF: > { %p884_p5 = scmp.ge.s32.totalorder %s1019_s10, 2  ;;  %s718_s22 = sand.u32 1, %s1007_s29  }
 0x274   : > { %s719_s18 = scalar_lea.sflag [#allocation4], %s718_s22 }
 0x275   : > { %p881_p13 = pnand %p884_p5, %p1117_p6 }
 0x277   : > { %p882_p0 = pneg %p881_p13 }
 0x279   : > { %1002 = dma.done.wait (%p882_p0), %s719_s18, 512  }
 0x27a   : > { %1004 = vsyncadd (%p882_p0), %s719_s18, 4294966784  ;;  %p20_p1 = scmp.ge.s32.totalorder %s1100_s12, 5   ;;  %s1290_s29 = smov %s1011_s30 }
 0x27b   : > { %s1291_s30 = smov %s1015_s9  ;;  %s1292_s9 = smov %s1111_s15 }
 0x27c   : > { %s1293_s10 = smov %s1100_s12  ;;  %22 = sbr.rel (!%p20_p1) target bundleno = 5 (0x5), region = 98 }
 0x281   :  { %732 = vsyncpa [#allocation4], 1 }
 0x282   :  { %734 = vsyncpa [#allocation4 + $0x1], 1 }

// kernel: discriminator_forward.1
= control target key start
LH: loop header
LB: loop body
LE: loop exit
PB: predicated region body
PF: predicated region fallthrough
CT: control target
= control target key end

     0   :  { %s1279_s0 = inlined_call_operand.<no memory space> [shape: f32[1], index: 0, kind: input, shape index: {}]   ;;  %s1280_s1 = inlined_call_operand.vmem [shape: bf16[48,128], index: 1, kind: input, shape index: {}]   ;;  %s1281_s2 = inlined_call_operand.vmem [shape: f32[48,256], index: 2, kind: input, shape index: {}]   ;;  %s1282_s3 = inlined_call_operand.vmem [shape: bf16[128,128], index: 3, kind: input, shape index: {}]   ;;  %s1283_s4 = inlined_call_operand.vmem [shape: f32[1,128], index: 4, kind: input, shape index: {}]   ;;  %s1284_s5 = inlined_call_operand.vmem [shape: bf16[128,256], index: 5, kind: input, shape index: {}]   ;;  %s1285_s6 = inlined_call_operand.vmem [shape: f32[1,256], index: 6, kind: input, shape index: {}]   ;;  %s1286_s7 = inlined_call_operand.hbm [shape: f32[48,256], index: 7, kind: output, shape index: {0}]   ;;  %s1287_s8 = inlined_call_operand.vmem [shape: f32[48,1], index: 8, kind: output, shape index: {1}]  }
   0x1   :  { %14 = sst [smem:[#allocation2]] %s1279_s0 }
   0x2   :  { %15 = vsyncpa [#allocation4], 0 }
   0x3   :  { %17 = vsyncpa [#allocation4 + $0x1], 0  ;;  %s1075_s29 = smov 0   ;;  %s1077_s30 = smov 0  }
   0x4   :  { %s1079_s9 = smov 0   ;;  %s1081_s10 = smov 0  }
   0x5 LB: > { %s1096_s0 = sadd.s32 4294967295, %s1019_s10   ;;  %s802_s11 = sadd.s32 4294967294, %s1019_s10   ;;  %s1019_s10 = sphi %s1081_s10, %s1293_s10   ;;  %s1015_s9 = sphi %s1079_s9, %s1292_s9   ;;  %s1011_s30 = sphi %s1077_s30, %s1291_s30   ;;  %s1007_s29 = sphi %s1075_s29, %s1290_s29  }
   0x6   : > { %s1100_s12 = sadd.s32 1, %s1019_s10   ;;  %s187_s13 = sadd.s32 1, %s1015_s9 }
   0x7   : > { %s184_s14 = ssub.s32 %s1019_s10, %s1100_s12  ;;  %p197_p0 = scmp.ne.s32.totalorder %s1015_s9, %s1011_s30 }
   0x8   : > { %p185_p1 = scmp.eq.s32.totalorder %s184_s14, 0  ;;  %p198_p2 = scmp.eq.s32.totalorder %s1096_s0, 2 }
   0x9   : > { %p203_p3 = scmp.ne.s32.totalorder %s1011_s30, %s1007_s29  ;;  %p204_p4 = scmp.eq.s32.totalorder %s802_s11, 2 }
   0xa   : > { %s1111_s15 = scalar_select %p185_p1, %s1015_s9, %s187_s13  }
   0xb   : > { %p1113_p5 = por %p198_p2, %p197_p0  ;;  %p1117_p6 = por %p204_p4, %p203_p3 }
   0xc   : > { %p805_p7 = scmp.ge.s32.totalorder %s1019_s10, 1  ;;  %p282_p8 = scmp.lt.s32.totalorder %s1019_s10, 4 }
   0xe   : > { %p283_p9 = pnand %p805_p7, %p282_p8 }
   0xf   : > { %s807_s22 = sshll.u32 (!%p283_p9), %s1096_s0, 1  ;;  %s848_s19 = sshll.u32 (!%p283_p9), %s1096_s0, 9 }
  0x10   : > { %286 = sbr.rel (%p283_p9) target bundleno = 627 (0x273), region = 48  ;;  %p328_p10 = scmp.lt.s32.totalorder (!%p283_p9), %s807_s22, 5 }
  0x11   : > { %s1231_s23 = scalar_lea.hbm (!%p283_p9), %s1286_s7, %s848_s19 }
  0x15   : > { %v922_v0 = vld [vmem:[%s1282_s3 + $0x38] sm:$0xff]   ;;  %v1021_v1 = vmov 0.0   ;;  %v923_v2 = vld [vmem:[%s1282_s3 + $0x30] sm:$0xff]   ;;  %vm1022_vm0 = vmmov 0   ;;  %s1295_s22 = smov (!%p328_p10, %s807_s22), 5  ;;  %v924_v3 = vld [vmem:[%s1282_s3 + $0x28] sm:$0xff]   ;;  %v489_v37 = vlaneseq }
  0x16   : > { %858 = vmatprep.subr.bf16.mxu0 %v1021_v1  ;;  %874 = vmatprep.mubr.msk.bf16.mxu0 %vm1022_vm0, %v1021_v1  ;;  %s808_s25 = sshll.u32 %s1295_s22, 2  ;;  %v931_v4 = vld [vmem:[%s1284_s5 + $0x74] ss:$8 sps:$4 sm:$0xff]   ;;  %v925_v5 = vld [vmem:[%s1282_s3 + $0x20] sm:$0xff]   ;;  %v933_v6 = vld [vmem:[%s1284_s5 + $0x70] ss:$8 sps:$4 sm:$0xff]  }
  0x17   : > { %859 = vmatpush3.bf16.msra.mxu0 %v922_v0  ;;  %s1139_s28 = scalar_lea.vmem %s1280_s1, %s808_s25  ;;  %579 = vmatprep.subr.bf16.mxu1 %v931_v4  ;;  %v934_v7 = vld [vmem:[%s1284_s5 + $0x64] ss:$8 sps:$4 sm:$0xff]   ;;  %v936_v8 = vld [vmem:[%s1284_s5 + $0x60] ss:$8 sps:$4 sm:$0xff]   ;;  %v937_v9 = vld [vmem:[%s1284_s5 + $0x54] ss:$8 sps:$4 sm:$0xff]  }
  0x18   : > { %860 = vmatprep.subr.bf16.mxu0 %v1021_v1  ;;  %580 = vmatpush1.bf16.msra.mxu1 %v933_v6  ;;  %v926_v10 = vld [vmem:[%s1282_s3 + $0x18] sm:$0xff]   ;;  %v940_v12 = vld [vmem:[%s1284_s5 + $0x44] ss:$8 sps:$4 sm:$0xff]   ;;  %v927_v13 = vld [vmem:[%s1282_s3 + $0x10] sm:$0xff]   ;;  %v1023_v26 = vmov 0   ;;  %v490_v38 = vshrl.u32 %v489_v37, 7 }
  0x19   : > { %581 = vmatprep.subr.bf16.mxu1 %v934_v7  ;;  %v939_v11 = vld [vmem:[%s1284_s5 + $0x50] ss:$8 sps:$4 sm:$0xff]   ;;  %v942_v14 = vld [vmem:[%s1284_s5 + $0x40] ss:$8 sps:$4 sm:$0xff]   ;;  %v943_v15 = vld [vmem:[%s1284_s5 + $0x34] ss:$8 sps:$4 sm:$0xff]   ;;  %611 = vmatprep.mubr.bf16.mxu1 %v1023_v26 }
  0x1a   : > { %v928_v16 = vld [vmem:[%s1282_s3 + $0x8] sm:$0xff]   ;;  %v945_v17 = vld [vmem:[%s1284_s5 + $0x30] ss:$8 sps:$4 sm:$0xff]   ;;  %v929_v19 = vld [vmem:[%s1282_s3] sm:$0xff]   ;;  %v491_v39 = vsub.s32 0, %v490_v38  ;;  %v495_v41 = vsub.s32 1, %v490_v38 }
  0x1b   : > { %861 = vmatpush3.bf16.msra.mxu0 %v923_v2  ;;  %v946_v18 = vld [vmem:[%s1284_s5 + $0x24] ss:$8 sps:$4 sm:$0xff]   ;;  %v948_v21 = vld [vmem:[%s1284_s5 + $0x20] ss:$8 sps:$4 sm:$0xff]   ;;  %v949_v22 = vld [vmem:[%s1284_s5 + $0x14] ss:$8 sps:$4 sm:$0xff]  }
  0x1c   : > { %862 = vmatprep.subr.bf16.mxu0 %v1021_v1  ;;  %582 = vmatpush1.bf16.msra.mxu1 %v936_v8  ;;  %v930_v20 = vld [vmem:[%s1139_s28] sm:$0xff]   ;;  %v951_v23 = vld [vmem:[%s1284_s5 + $0x10] ss:$8 sps:$4 sm:$0xff]   ;;  %s317_s25 = sand.u32 1, %s1011_s30   ;;  %s846_s27 = sshll.u32 %s1295_s22, 4 }
  0x1d   : > { %583 = vmatprep.subr.bf16.mxu1 %v937_v9  ;;  %v952_v24 = vld [vmem:[%s1284_s5 + $0x4] ss:$8 sps:$4 sm:$0xff]   ;;  %v954_v25 = vld [vmem:[%s1284_s5] ss:$8 sps:$4 sm:$0xff]   ;;  %s806_s26 = sshll.u32 %s317_s25, 5  ;;  %s338_s14 = scalar_lea.vmem %s1281_s2, %s846_s27 }
  0x1e   : > { %v814_v27 = vld [vmem:[%s1283_s4] ss:$0 sm:$0xff]  ;;  %s1218_s28 = scalar_lea.vmem [#allocation3], %s806_s26  ;;  %v631_v53 = vld [vmem:[%s338_s14 + $0x8] sm:$0xff]  ;;  %v632_v0 = vld [vmem:[%s338_s14 + $0x10] sm:$0xff]  ;;  %s1235_s24 = scalar_lea.sflag [#allocation4], %s317_s25 }
  0x1f   : > { %863 = vmatpush3.bf16.msra.mxu0 %v924_v3  ;;  %v487_v40 = vld [vmem:[%s1285_s6] sm:$0x3]  ;;  %v655_v56 = vmul.f32 %v631_v53, %v631_v53  ;;  %v656_v4 = vmul.f32 %v632_v0, %v632_v0  ;;  %s699_s18 = sshll.u32 %s1218_s28, 4  ;;  %s1024_s27 = smov [#allocation3]   ;;  %s1225_s18 = int_to_ptr.vmem [resolvable:$true] %s699_s18 }
  0x20   : > { %864 = vmatprep.subr.bf16.mxu0 %v1021_v1  ;;  %584 = vmatpush1.bf16.msra.mxu1 %v939_v11  ;;  %v492_v42 = vrot.slane %v487_v40, %v491_v39  ;;  %v496_v43 = vrot.slane %v487_v40, %v495_v41  ;;  %v630_v52 = vld [vmem:[%s338_s14] sm:$0xff]  ;;  %s959_s26 = scalar_lea.vmem %s1225_s18, 512  ;;  %s963_s11 = sshll.u32 %s1024_s27, 4  ;;  %s964_s11 = int_to_ptr.vmem [resolvable:$false] %s963_s11 }
  0x21   : > { %585 = vmatprep.subr.bf16.mxu1 %v940_v12  ;;  %v654_v55 = vmul.f32 %v630_v52, %v630_v52  ;;  %p960_p11 = scmp.ne.s32.totalorder %s1225_s18, %s959_s26  ;;  %s965_s13 = scalar_lea.vmem %s964_s11, 1024 }
  0x22   : > { %p966_p0 = scmp.lt.s32.totalorder %s1225_s18, %s964_s11  ;;  %p967_p1 = scmp.lt.s32.totalorder %s965_s13, %s959_s26 }
  0x23   : > { %865 = vmatpush3.bf16.msra.mxu0 %v925_v5  ;;  %v658_v63 = vadd.f32 %v655_v56, %v654_v55  ;;  %p961_p12 = pnand %p960_p11, %p1113_p5 }
  0x24   : > { %866 = vmatprep.subr.bf16.mxu0 %v1021_v1  ;;  %586 = vmatpush1.bf16.msra.mxu1 %v942_v14  ;;  %p968_p2 = por %p967_p1, %p966_p0 }
  0x25   : > { %587 = vmatprep.subr.bf16.mxu1 %v943_v15  ;;  %p962_p13 = pneg %p961_p12 }
  0x27   : > { %867 = vmatpush3.bf16.msra.mxu0 %v926_v10  ;;  %p969_p3 = pnand %p968_p2, %p962_p13 }
  0x28   : > { %868 = vmatprep.subr.bf16.mxu0 %v1021_v1  ;;  %588 = vmatpush1.bf16.msra.mxu1 %v945_v17 }
  0x29   : > { %589 = vmatprep.subr.bf16.mxu1 %v946_v18 }
  0x2b   : > { %869 = vmatpush3.bf16.msra.mxu0 %v927_v13 }
  0x2c   : > { %870 = vmatprep.subr.bf16.mxu0 %v1021_v1  ;;  %590 = vmatpush1.bf16.msra.mxu1 %v948_v21 }
  0x2d   : > { %591 = vmatprep.subr.bf16.mxu1 %v949_v22 }
  0x2f   : > { %871 = vmatpush3.bf16.msra.mxu0 %v928_v16 }
  0x30   : > { %872 = vmatprep.subr.bf16.mxu0 %v1021_v1  ;;  %592 = vmatpush1.bf16.msra.mxu1 %v951_v23  ;;  %v633_v1 = vld [vmem:[%s338_s14 + $0x18] sm:$0xff] }
  0x31   : > { %593 = vmatprep.subr.bf16.mxu1 %v952_v24  ;;  %v657_v5 = vmul.f32 %v633_v1, %v633_v1 }
  0x33   : > { %873 = vmatpush3.bf16.msra.mxu0 %v929_v19  ;;  %v661_v8 = vadd.f32 %v657_v5, %v656_v4 }
  0x34   : > { %594 = vmatpush1.bf16.msra.mxu1 %v954_v25 }
  0x36   : > { %875 = vmatmul.mubr.bf16.vlgmr.msra.gmra.mxu0 %v930_v20 }
  0xf6   : > { %v461_v28 = vpop.f32.mrf.mxu0 }
  0xf7   : > { %v462_v30 = vadd.f32 %v814_v27, %v461_v28 }
  0xf8   : > { %v876_v29 = vpop.f32.mrf.mxu0 }
  0xf9   : > { %v468_v34 = vmax.f32 %v462_v30, 0.0 }
  0xfa   : > { %v464_v31 = vpop.f32.mrf.mxu0 }
  0xfb   : > { %v465_v32 = vadd.f32 %v814_v27, %v464_v31 }
  0xfc   : > { %v877_v33 = vpop.f32.mrf.mxu0 }
  0xfd   : > { %v469_v35 = vmax.f32 %v465_v32, 0.0 }
  0xff   : > { %v470_v36 = vpack.c.bf16 %v469_v35, %v468_v34 }
 0x101   : > { %612 = vmatmul.mubr.bf16.vlgmr.msra.gmra.mxu1 %v470_v36 }
 0x1c1   : > { %v613_v44 = vpop.f32.mrf.mxu1 }
 0x1c2   : > { %v614_v45 = vadd.f32 %v613_v44, %v492_v42 }
 0x1c3   : > { %v615_v46 = vpop.f32.mrf.mxu1 }
 0x1c4   : > { %v622_v47 = vmax.f32 %v614_v45, 0.0  ;;  %v616_v48 = vadd.f32 %v615_v46, %v496_v43 }
 0x1c5   : > { %v617_v49 = vpop.f32.mrf.mxu1 }
 0x1c6   : > { %626 = vst [vmem:[%s1218_s28] sm:$0xff] %v622_v47  ;;  %v623_v50 = vmax.f32 %v616_v48, 0.0  ;;  %v618_v51 = vadd.f32 %v617_v49, %v492_v42  ;;  %v644_v59 = vmul.f32 %v622_v47, %v622_v47  ;;  %v634_v9 = vmul.f32 %v630_v52, %v622_v47 }
 0x1c7   : > { %v619_v54 = vpop.f32.mrf.mxu1 }
 0x1c8   : > { %627 = vst [vmem:[%s1218_s28 + $0x8] sm:$0xff] %v623_v50  ;;  %v624_v57 = vmax.f32 %v618_v51, 0.0  ;;  %v620_v58 = vadd.f32 %v619_v54, %v496_v43  ;;  %v645_v60 = vmul.f32 %v623_v50, %v623_v50  ;;  %v635_v7 = vmul.f32 %v631_v53, %v623_v50 }
 0x1ca   : > { %628 = vst [vmem:[%s1218_s28 + $0x10] sm:$0xff] %v624_v57  ;;  %v625_v61 = vmax.f32 %v620_v58, 0.0  ;;  %v648_v62 = vadd.f32 %v645_v60, %v644_v59  ;;  %v646_v2 = vmul.f32 %v624_v57, %v624_v57  ;;  %v638_v10 = vadd.f32 %v635_v7, %v634_v9 }
 0x1cb   : > { %v636_v12 = vmul.f32 %v632_v0, %v624_v57 }
 0x1cc   : > { %629 = vst [vmem:[%s1218_s28 + $0x18] sm:$0xff] %v625_v61  ;;  %649 = vadd.xlane.f32.xlu0 %v648_v62  ;;  %v647_v3 = vmul.f32 %v625_v61, %v625_v61  ;;  %v637_v11 = vmul.f32 %v633_v1, %v625_v61 }
 0x1ce   : > { %v651_v6 = vadd.f32 %v647_v3, %v646_v2  ;;  %v641_v13 = vadd.f32 %v637_v11, %v636_v12 }
 0x1d0   : > { %652 = vadd.xlane.f32.xlu1 %v651_v6  ;;  %659 = vadd.xlane.f32.xlu0 %v658_v63 }
 0x1d4   : > { %662 = vadd.xlane.f32.xlu1 %v661_v8  ;;  %639 = vadd.xlane.f32.xlu0 %v638_v10 }
 0x1d8   : > { %642 = vadd.xlane.f32.xlu1 %v641_v13 }
 0x1d9   : > { %972 = shalt.err (!%p969_p3)
}
 0x1da   : > { %s973_s0 = scalar_lea.hbm %s1231_s23, 512  ;;  %s977_s28 = scalar_lea.hbm %s1286_s7, 1536 }
 0x1db   : > { %p974_p4 = scmp.ne.s32.totalorder %s1231_s23, %s973_s0  ;;  %p978_p9 = scmp.lt.s32.totalorder %s1231_s23, %s1286_s7 }
 0x1dc   : > { %p979_p10 = scmp.lt.s32.totalorder %s977_s28, %s973_s0 }
 0x1dd   : > { %p975_p7 = pnand %p974_p4, %p1113_p5 }
 0x1de   : > { %p980_p11 = por %p979_p10, %p978_p9 }
 0x1df   : > { %p976_p8 = pneg %p975_p7 }
 0x1e1   : > { %p981_p12 = pnand %p980_p11, %p976_p8 }
 0x1e3   : > { %984 = shalt.err (!%p981_p12)
}
 0x1e4   : > { %s1025_s21 = smov 256   ;;  %s1026_s26 = smov 16   ;;  %vm676_vm1 = vcmask 7168  }
 0x1e5   : > { %878 = dma.vmem_to_hbm [thread:$0]  (%p1113_p5), %s1225_s18, 512, %s1231_s23, %s1235_s24, %s1025_s21, %s1025_s21, %s1026_s26  }
 0x1e6   : > { %s670_s27 = sld [smem:[#allocation2]]  ;;  %s813_s11 = sshll.u32 %s1295_s22, 3 }
 0x1e7   : > { %s345_s16 = scalar_lea.vmem %s1287_s8, %s813_s11 }
 0x1ec   : > { %v671_v22 = vstv %s670_s27 }
 0x255   : > { %v650_v14 = vpop.xlane.xlu0 %649 }
 0x259   : > { %v653_v15 = vpop.xlane.xlu1 %652  ;;  %v660_v16 = vpop.xlane.xlu0 %659 }
 0x25a   : > { %v664_v17 = vmul.f32 %v660_v16, %v650_v14 }
 0x25c   : > { %v666_v18 = vmax.f32 %v664_v17, 1e-16 }
 0x25d   : > { %v663_v19 = vpop.xlane.xlu1 %662  ;;  %v640_v23 = vpop.xlane.xlu0 %639 }
 0x25e   : > { %955 = vrsqrt.f32 %v666_v18  ;;  %v665_v20 = vmul.f32 %v663_v19, %v653_v15  ;;  %v672_v24 = vmul.f32 %v671_v22, %v640_v23 }
 0x260   : > { %v667_v21 = vmax.f32 %v665_v20, 1e-16 }
 0x261   : > { %v643_v26 = vpop.xlane.xlu1 %642 }
 0x262   : > { %957 = vrsqrt.f32 %v667_v21  ;;  %v673_v28 = vmul.f32 %v671_v22, %v643_v26 }
 0x26b   : > { %v956_v25 = vpop.eup %955 }
 0x26c   : > { %v674_v27 = vmul.f32 %v956_v25, %v672_v24 }
 0x26e   : > { %677 = vst.msk [vmem:[%s345_s16] sm:$0xff] %vm676_vm1, %v674_v27 }
 0x26f   : > { %v958_v29 = vpop.eup %957 }
 0x270   : > { %v675_v30 = vmul.f32 %v958_v29, %v673_v28 }
 0x272   : > { %678 = vst.msk [vmem:[%s345_s16 + $0x8] sm:$0xff] %vm676_vm1, %v675_v30 }
 0x273 PF: > { %p884_p5 = scmp.ge.s32.totalorder %s1019_s10, 2  ;;  %s718_s22 = sand.u32 1, %s1007_s29  }
 0x274   : > { %s719_s18 = scalar_lea.sflag [#allocation4], %s718_s22 }
 0x275   : > { %p881_p13 = pnand %p884_p5, %p1117_p6 }
 0x277   : > { %p882_p0 = pneg %p881_p13 }
 0x279   : > { %1002 = dma.done.wait (%p882_p0), %s719_s18, 512  }
 0x27a   : > { %1004 = vsyncadd (%p882_p0), %s719_s18, 4294966784  ;;  %p20_p1 = scmp.ge.s32.totalorder %s1100_s12, 5   ;;  %s1290_s29 = smov %s1011_s30 }
 0x27b   : > { %s1291_s30 = smov %s1015_s9  ;;  %s1292_s9 = smov %s1111_s15 }
 0x27c   : > { %s1293_s10 = smov %s1100_s12  ;;  %22 = sbr.rel (!%p20_p1) target bundleno = 5 (0x5), region = 98 }
 0x281   :  { %732 = vsyncpa [#allocation4], 1 }
 0x282   :  { %734 = vsyncpa [#allocation4 + $0x1], 1 }

</bundles_post_ra>
